<compile_context>
chip_gen: v5e
topology: v5e:2x2
jax: 0.10.0
libtpu: 0.0.40
codegen_flags: <defaults>
</compile_context>

<pallas_src>
import functools

import jax
import jax.numpy as jnp
from jax.experimental import pallas as pl
from jax.experimental.pallas import tpu as pltpu


def _simam_kernel(x_ref, o_ref, *, inv_n, e_lambda):
    # x_ref: (row_tile, HW) -- a block of channel-planes, full spatial extent.
    x = x_ref[...].astype(jnp.float32)

    mu = jnp.mean(x, axis=-1, keepdims=True)       # per-row mean over H*W
    d = x - mu
    d2 = d * d
    s = jnp.sum(d2, axis=-1, keepdims=True)        # per-row sum of squared devs

    # Per-row scale 0.25 / (s/n + lambda): a (row_tile, 1) divide instead of a
    # full-tile divide; the tile-wide op below is a single multiply.
    inv4 = 0.25 / (s * inv_n + e_lambda)
    y = d2 * inv4 + 0.5

    o_ref[...] = (x * jax.nn.sigmoid(y)).astype(o_ref.dtype)


def _choose_row_tile(rows, hw, itemsize):
    """Pick the sublane (row) tile from a ~1 MiB working-set budget."""
    pack = max(8, 32 // max(itemsize, 1))          # 8 f32, 16 bf16, 32 int8/fp8
    budget_rows = max(1, ((1 << 20) // 4) // max(hw, 1))   # ~1 MiB of f32 work
    rt = max(pack, (budget_rows // pack) * pack)

    rows8 = ((rows + 7) // 8) * 8                  # hard sublane constraint: %8
    rt = min(rt, rows8)                            # never taller than needed

    # If one block would cover everything, split into >=2 grid steps so the
    # pipeline (and v7x's two TensorCores via the "parallel" axis) have work.
    if rt == rows8 and rows8 >= 16:
        rt = max(8, ((rows8 // 2 + 7) // 8) * 8)
    return rt


def simam(x, e_lambda=1e-4, row_tile=None):
    """SimAM forward. x: (B, C, H, W). Returns array of same shape/dtype."""
    b, c, h, w = x.shape
    hw = h * w
    rows = b * c
    n_eff = hw - 1
    inv_n = (1.0 / n_eff) if n_eff > 0 else float("inf")   # match torch's /0

    itemsize = jnp.dtype(x.dtype).itemsize
    if row_tile is None:
        row_tile = _choose_row_tile(rows, hw, itemsize)

    x2d = x.reshape(rows, hw)
    grid = (pl.cdiv(rows, row_tile),)

    # Raise the scoped-VMEM limit only if the minimum block is unusually big
    # (huge H*W); otherwise default limits on v5e/v6e/v7x are plenty.
    block_elems = row_tile * hw
    est_bytes = 4 * block_elems * itemsize + 5 * block_elems * 4
    vmem_limit = None
    if est_bytes > 12 * 1024 * 1024:
        vmem_limit = min(48 * 1024 * 1024, int(est_bytes) + (4 << 20))

    kernel = functools.partial(_simam_kernel, inv_n=inv_n, e_lambda=e_lambda)

    out2d = pl.pallas_call(
        kernel,
        out_shape=jax.ShapeDtypeStruct((rows, hw), x.dtype),
        grid_spec=pltpu.PrefetchScalarGridSpec(
            num_scalar_prefetch=0,
            grid=grid,
            in_specs=[pl.BlockSpec((row_tile, hw), lambda i: (i, 0))],
            out_specs=pl.BlockSpec((row_tile, hw), lambda i: (i, 0)),
        ),
        compiler_params=pltpu.CompilerParams(
            dimension_semantics=("parallel",),
            vmem_limit_bytes=vmem_limit,
        ),
        cost_estimate=pl.CostEstimate(
            flops=8 * rows * hw,
            transcendentals=rows * hw,
            bytes_accessed=2 * rows * hw * itemsize,
        ),
    )(x2d)

    return out2d.reshape(b, c, h, w)


def simam_ref(x, e_lambda=1e-4):
    """Pure-JAX reference mirroring the PyTorch forward exactly."""
    b, c, h, w = x.shape
    n = w * h - 1
    mu = jnp.mean(x, axis=(2, 3), keepdims=True)
    d2 = (x - mu) ** 2
    y = d2 / (4.0 * (jnp.sum(d2, axis=(2, 3), keepdims=True) / n + e_lambda)) + 0.5
    return x * jax.nn.sigmoid(y)


if __name__ == "__main__":
    k0, k1 = jax.random.split(jax.random.PRNGKey(0))

    # Small NCHW input consistent with the module's forward.
    x = jax.random.normal(k0, (2, 4, 16, 16), dtype=jnp.float32)
    out = jax.block_until_ready(simam(x))
    ref = simam_ref(x)
    assert out.shape == x.shape and out.dtype == x.dtype
    assert jnp.allclose(out, ref, atol=1e-5, rtol=1e-5), "mismatch vs reference"

    # Exercise the partial last block (rows not a multiple of the row tile).
    x2 = jax.random.normal(k1, (2, 5, 16, 16), dtype=jnp.float32)
    out2 = jax.block_until_ready(simam(x2))
    assert jnp.allclose(out2, simam_ref(x2), atol=1e-5, rtol=1e-5), "partial-block mismatch"

    # bf16 I/O at the HBM boundary (f32 math inside the kernel).
    xb = x.astype(jnp.bfloat16)
    outb = jax.block_until_ready(simam(xb))
    refb = simam_ref(xb.astype(jnp.float32))
    assert outb.dtype == jnp.bfloat16
    assert jnp.allclose(outb.astype(jnp.float32), refb, atol=2e-2, rtol=2e-2), "bf16 mismatch"

    print("KERNEL_OK")
</pallas_src>

<mosaic_0001>
module attributes {stable_mosaic.version = 11 : i64} {
  func.func @_simam_kernel(%arg0: i32, %arg1: memref<8x256xf32, #tpu.memory_space<vmem>>, %arg2: memref<8x256xf32, #tpu.memory_space<vmem>>) attributes {dimension_semantics = [#tpu.dimension_semantics<parallel>], iteration_bounds = array<i64: 1>, scalar_prefetch = 0 : i64, scratch_operands = 0 : i64, tpu.core_type = #tpu.core_type<tc>, window_params = [{transform_indices = @transform_0, window_bounds = array<i64: 8, 256>}, {transform_indices = @transform_1, window_bounds = array<i64: 8, 256>}]} {
    %c0 = arith.constant 0 : index
    %c0_0 = arith.constant 0 : index
    %0 = vector.load %arg1[%c0, %c0_0] : memref<8x256xf32, #tpu.memory_space<vmem>>, vector<8x256xf32>
    %cst = arith.constant dense<0.000000e+00> : vector<8xf32>
    %1 = vector.multi_reduction <add>, %0, %cst [1] : vector<8x256xf32> to vector<8xf32>
    %2 = vector.shape_cast %1 : vector<8xf32> to vector<8x1xf32>
    %cst_1 = arith.constant 2.560000e+02 : f32
    %3 = vector.broadcast %cst_1 : f32 to vector<8x1xf32>
    %4 = arith.divf %2, %3 : vector<8x1xf32>
    %5 = vector.broadcast %4 : vector<8x1xf32> to vector<8x256xf32>
    %6 = arith.subf %0, %5 : vector<8x256xf32>
    %7 = arith.mulf %6, %6 : vector<8x256xf32>
    %cst_2 = arith.constant dense<0.000000e+00> : vector<8xf32>
    %8 = vector.multi_reduction <add>, %7, %cst_2 [1] : vector<8x256xf32> to vector<8xf32>
    %9 = vector.shape_cast %8 : vector<8xf32> to vector<8x1xf32>
    %cst_3 = arith.constant 0.00392156886 : f32
    %10 = vector.broadcast %cst_3 : f32 to vector<8x1xf32>
    %11 = arith.mulf %9, %10 : vector<8x1xf32>
    %cst_4 = arith.constant 9.99999974E-5 : f32
    %12 = vector.broadcast %cst_4 : f32 to vector<8x1xf32>
    %13 = arith.addf %11, %12 : vector<8x1xf32>
    %cst_5 = arith.constant 2.500000e-01 : f32
    %14 = vector.broadcast %cst_5 : f32 to vector<8x1xf32>
    %15 = arith.divf %14, %13 : vector<8x1xf32>
    %16 = vector.broadcast %15 : vector<8x1xf32> to vector<8x256xf32>
    %17 = arith.mulf %7, %16 : vector<8x256xf32>
    %cst_6 = arith.constant 5.000000e-01 : f32
    %18 = vector.broadcast %cst_6 : f32 to vector<8x256xf32>
    %19 = arith.addf %17, %18 : vector<8x256xf32>
    %20 = arith.negf %19 : vector<8x256xf32>
    %21 = math.exp %20 : vector<8x256xf32>
    %cst_7 = arith.constant 1.000000e+00 : f32
    %22 = vector.broadcast %cst_7 : f32 to vector<8x256xf32>
    %23 = arith.addf %22, %21 : vector<8x256xf32>
    %24 = arith.divf %22, %23 : vector<8x256xf32>
    %25 = arith.mulf %0, %24 : vector<8x256xf32>
    %c0_8 = arith.constant 0 : index
    %c0_9 = arith.constant 0 : index
    %26 = vector.load %arg2[%c0_8, %c0_9] : memref<8x256xf32, #tpu.memory_space<vmem>>, vector<8x256xf32>
    tpu.vector_store %arg2[%c0_8, %c0_9], %25 {strides = array<i32>} : memref<8x256xf32, #tpu.memory_space<vmem>>, vector<8x256xf32>,
    return
  }
  func.func @transform_0(%arg0: i32) -> (i32, i32) {
    %c0_i32 = arith.constant 0 : i32
    %c0_i32_0 = arith.constant 0 : i32
    return %arg0, %c0_i32 : i32, i32
  }
  func.func @transform_1(%arg0: i32) -> (i32, i32) {
    %c0_i32 = arith.constant 0 : i32
    %c0_i32_0 = arith.constant 0 : i32
    return %arg0, %c0_i32 : i32, i32
  }
}

</mosaic_0001>

<bundles_post_ra>
// kernel: tpu_custom_call.1
= control target key start
LH: loop header
LB: loop body
LE: loop exit
PB: predicated region body
PF: predicated region fallthrough
CT: control target
= control target key end

     0   :  { %6 = vsyncpa [#allocation3], 0  ;;  %s221_s0 = inlined_call_operand.hbm [shape: f32[8,256], index: 0, kind: input, shape index: {}]   ;;  %s222_s1 = inlined_call_operand.hbm [shape: f32[8,256], index: 1, kind: output, shape index: {}]  }
   0x1   :  { %7 = vsyncpa [#allocation4], 0  ;;  %s13_s8 = sshll.u32 %s221_s0, 4  ;;  %s192_s9 = smov [#allocation2]   ;;  %s14_s8 = int_to_ptr.hbm [resolvable:$true] %s13_s8 }
   0x2   :  { %s15_s10 = sshll.u32 %s192_s9, 4  ;;  %s16_s10 = int_to_ptr.vmem [resolvable:$true] %s15_s10 }
   0x3   :  { %18 = dma.hbm_to_vmem [thread:$0]  %s14_s8, 256, %s16_s10, [#allocation3]  }
   0x4   :  { %188 = dma.done.wait [#allocation3], 256  }
   0x5   :  { %189 = vsyncadd [#allocation3], 4294967040  ;;  %v208_v0 = vld [vmem:[#allocation2] sm:$0xff]  ;;  %v210_v1 = vld [vmem:[#allocation2 + $0x8] sm:$0xff]  ;;  %v193_v3 = vmov 256.0   ;;  %s194_s0 = smov [#allocation5]  }
   0x6   :  { %v25_v2 = vadd.f32 %v210_v1, %v208_v0  ;;  %128 = vrcp.f32 %v193_v3  ;;  %s111_s11 = sshll.u32 %s194_s0, 4  ;;  %s113_s14 = sshll.u32 %s222_s1, 4  ;;  %s112_s11 = int_to_ptr.vmem [resolvable:$true] %s111_s11  ;;  %s114_s14 = int_to_ptr.hbm [resolvable:$true] %s113_s14 }
   0x8   :  { %26 = vadd.xlane.f32.xlu0 %v25_v2 }
   0xc   :  { %v129_v4 = vpop.eup %128 }
   0xd   :  { %v29_v5 = vmul.f32 256.0, %v129_v4  ;;  %vm33_vm0 = vweird.f32 %v129_v4 }
   0xf   :  { %v30_v6 = vsub.f32 1.0, %v29_v5 }
  0x11   :  { %v31_v7 = vmul.f32 %v129_v4, %v30_v6 }
  0x13   :  { %v32_v8 = vadd.f32 %v129_v4, %v31_v7 }
  0x15   :  { %v34_v9 = vsel %vm33_vm0, %v129_v4, %v32_v8 }
  0x7b   :  { %v27_v10 = vpop.xlane.xlu0 %26 }
  0x7c   :  { %v35_v11 = vmul.f32 %v34_v9, %v27_v10 }
  0x7e   :  { %v36_v12 = vsub.f32 %v208_v0, %v35_v11  ;;  %v37_v13 = vsub.f32 %v210_v1, %v35_v11 }
  0x80   :  { %v38_v14 = vmul.f32 %v36_v12, %v36_v12  ;;  %v39_v15 = vmul.f32 %v37_v13, %v37_v13 }
  0x82   :  { %v40_v16 = vadd.f32 %v39_v15, %v38_v14 }
  0x84   :  { %41 = vadd.xlane.f32.xlu0 %v40_v16 }
  0xf7   :  { %v42_v17 = vpop.xlane.xlu0 %41 }
  0xf8   :  { %v43_v18 = vmul.f32 0.003921569, %v42_v17 }
  0xfa   :  { %v44_v19 = vadd.f32 0.0001, %v43_v18 }
  0xfc   :  { %130 = vrcp.f32 %v44_v19  ;;  %v56_v23 = vand.u32 2147483648, %v44_v19  ;;  %v54_v25 = vand.u32 2147483647, %v44_v19  ;;  %vm50_vm2 = vweird.f32 %v44_v19 }
  0xfe   :  { %v57_v27 = vor.u32 1.1754944e-38, %v56_v23  ;;  %vm55_vm4 = vcmp.eq.f32.partialorder %v54_v25, 8.507059e+37 }
 0x102   :  { %v131_v20 = vpop.eup %130 }
 0x103   :  { %v46_v21 = vmul.f32 %v131_v20, %v44_v19  ;;  %vm51_vm1 = vweird.f32 %v131_v20 }
 0x104   :  { %vm52_vm3 = vmor %vm50_vm2, %vm51_vm1 }
 0x105   :  { %v47_v22 = vsub.f32 1.0, %v46_v21 }
 0x107   :  { %v48_v24 = vmul.f32 %v131_v20, %v47_v22 }
 0x109   :  { %v49_v26 = vadd.f32 %v131_v20, %v48_v24 }
 0x10b   :  { %v53_v28 = vsel %vm52_vm3, %v131_v20, %v49_v26 }
 0x10c   :  { %v58_v29 = vsel %vm55_vm4, %v57_v27, %v53_v28 }
 0x10d   :  { %v59_v30 = vmul.f32 0.25, %v58_v29 }
 0x10f   :  { %v60_v31 = vmul.f32 %v59_v30, %v38_v14  ;;  %v61_v32 = vmul.f32 %v59_v30, %v39_v15 }
 0x111   :  { %v62_v33 = vadd.f32 0.5, %v60_v31  ;;  %v63_v34 = vadd.f32 0.5, %v61_v32 }
 0x113   :  { %v123_v35 = vmul.f32 -1.442695, %v62_v33  ;;  %v124_v36 = vmul.f32 -1.442695, %v63_v34 }
 0x115   :  { %132 = vpow2.f32 %v123_v35 }
 0x116   :  { %134 = vpow2.f32 %v124_v36 }
 0x11b   :  { %v133_v37 = vpop.eup %132 }
 0x11c   :  { %v135_v38 = vpop.eup %134  ;;  %v70_v39 = vadd.f32 1.0, %v133_v37 }
 0x11d   :  { %v71_v40 = vadd.f32 1.0, %v135_v38 }
 0x11e   :  { %136 = vrcp.f32 %v70_v39  ;;  %v83_v46 = vand.u32 2147483648, %v70_v39  ;;  %v81_v49 = vand.u32 2147483647, %v70_v39  ;;  %vm77_vm7 = vweird.f32 %v70_v39 }
 0x11f   :  { %138 = vrcp.f32 %v71_v40  ;;  %v98_v50 = vand.u32 2147483648, %v71_v40  ;;  %v96_v52 = vand.u32 2147483647, %v71_v40  ;;  %vm92_vm9 = vweird.f32 %v71_v40 }
 0x120   :  { %v84_v54 = vor.u32 1.1754944e-38, %v83_v46  ;;  %vm82_vm10 = vcmp.eq.f32.partialorder %v81_v49, 8.507059e+37 }
 0x121   :  { %v99_v57 = vor.u32 1.1754944e-38, %v98_v50  ;;  %vm97_vm12 = vcmp.eq.f32.partialorder %v96_v52, 8.507059e+37 }
 0x124   :  { %v137_v41 = vpop.eup %136 }
 0x125   :  { %v139_v42 = vpop.eup %138  ;;  %v73_v43 = vmul.f32 %v137_v41, %v70_v39  ;;  %vm78_vm5 = vweird.f32 %v137_v41 }
 0x126   :  { %v88_v44 = vmul.f32 %v139_v42, %v71_v40  ;;  %vm93_vm6 = vweird.f32 %v139_v42  ;;  %vm79_vm8 = vmor %vm77_vm7, %vm78_vm5 }
 0x127   :  { %v74_v45 = vsub.f32 1.0, %v73_v43  ;;  %vm94_vm11 = vmor %vm92_vm9, %vm93_vm6 }
 0x128   :  { %v89_v47 = vsub.f32 1.0, %v88_v44 }
 0x129   :  { %v75_v48 = vmul.f32 %v137_v41, %v74_v45 }
 0x12a   :  { %v90_v51 = vmul.f32 %v139_v42, %v89_v47 }
 0x12b   :  { %v76_v53 = vadd.f32 %v137_v41, %v75_v48 }
 0x12c   :  { %v91_v55 = vadd.f32 %v139_v42, %v90_v51 }
 0x12d   :  { %v80_v56 = vsel %vm79_vm8, %v137_v41, %v76_v53 }
 0x12e   :  { %v85_v58 = vsel %vm82_vm10, %v84_v54, %v80_v56  ;;  %v95_v59 = vsel %vm94_vm11, %v139_v42, %v91_v55 }
 0x12f   :  { %v100_v60 = vsel %vm97_vm12, %v99_v57, %v95_v59  ;;  %v102_v61 = vmul.f32 %v85_v58, %v208_v0 }
 0x130   :  { %v103_v62 = vmul.f32 %v100_v60, %v210_v1 }
 0x131   :  { %104 = vst [vmem:[#allocation5] sm:$0xff] %v102_v61 }
 0x132   :  { %105 = vst [vmem:[#allocation5 + $0x8] sm:$0xff] %v103_v62 }
 0x133   :  { %116 = dma.vmem_to_hbm [thread:$0]  %s112_s11, 256, %s114_s14, [#allocation4]  }
 0x134   :  { %190 = dma.done.wait [#allocation4], 256  }
 0x135   :  { %191 = vsyncadd [#allocation4], 4294967040 }
 0x136   :  { %121 = vsyncpa [#allocation3], 1 }
 0x137   :  { %122 = vsyncpa [#allocation4], 1 }

</bundles_post_ra>
